<compile_context>
chip_gen: v7x
topology: tpu7x:2x2x1
jax: 0.10.0
libtpu: 0.0.40
codegen_flags: <defaults>
</compile_context>

<pallas_src>
import jax
import jax.numpy as jnp
from jax import lax
from jax.experimental import pallas as pl
from jax.experimental.pallas import tpu as pltpu


def _round_up(x, m):
    return ((x + m - 1) // m) * m


def _edge_mlp_kernel(ids_ref, e_ref, p_ref, w1e_ref, b1_ref, w2_ref, b2_ref, o_ref):
    tile_e = ids_ref.shape[0]
    two_n = p_ref.shape[0]                      # 2 * num_nodes

    # ids_ref holds [row, N + col] per edge (col pre-offset in the wrapper).
    rc = ids_ref[...]                           # (tile_e, 2) int32
    node_iota = lax.broadcasted_iota(jnp.int32, (tile_e, two_n), 1)
    two_hot = jnp.logical_or(node_iota == rc[:, 0:1],
                             node_iota == rc[:, 1:2]).astype(jnp.float32)

    # Fused gather + first Linear:  two_hot @ P == nf[row]@W1u + nf[col]@W1v.
    # HIGHEST precision keeps the row selection exact in f32 (one-hot values are
    # exactly representable; default precision could bf16-round P in the matmul).
    h = jnp.dot(two_hot, p_ref[...], precision=lax.Precision.HIGHEST,
                preferred_element_type=jnp.float32)
    h = h + jnp.dot(e_ref[...], w1e_ref[...], preferred_element_type=jnp.float32)
    h = jnp.maximum(h + b1_ref[...], 0.0)       # ReLU

    # Second Linear (output columns lane-padded to a multiple of 128) + ReLU.
    o = jnp.dot(h, w2_ref[...], preferred_element_type=jnp.float32) + b2_ref[...]
    o_ref[...] = jnp.maximum(o, 0.0).astype(o_ref.dtype)


def edge_model_forward(node_feats, edge_index, edge_attr, params, *, tile_e=2048):
    """Pallas implementation of EdgeModel.forward."""
    row = edge_index[0].astype(jnp.int32)
    col = edge_index[1].astype(jnp.int32)
    E = row.shape[0]
    N, dn = node_feats.shape
    de = edge_attr.shape[1]

    w1, b1, w2, b2 = params["w1"], params["b1"], params["w2"], params["b2"]
    b1 = b1.reshape(1, -1)
    b2 = b2.reshape(1, -1)
    din, hdim = w1.shape
    odim = w2.shape[1]
    assert din == 2 * dn + de, "first Linear must take the concatenated feature"

    # Fuse the gather with the first Linear: project the node table through the
    # row/col halves of W1 once, then the kernel only selects rows of P.
    p = jnp.concatenate([node_feats @ w1[:dn], node_feats @ w1[dn:2 * dn]], axis=0)
    w1_e = w1[2 * dn:]                                         # (de, H)

    # Lane-dense output: pad output columns to a multiple of 128 (sliced off below).
    opad = _round_up(odim, 128)
    w2_p = jnp.pad(w2, ((0, 0), (0, opad - odim)))
    b2_p = jnp.pad(b2, ((0, 0), (0, opad - odim)))

    # ---- Edge tile sizing (generation-aware) --------------------------------
    lanes = lambda d: _round_up(max(int(d), 1), 128)
    subl = lambda d: _round_up(max(int(d), 1), 8)
    # Constant operands, worst case x2 buffers (fallback path without Buffered(1)).
    const_bytes = 8 * (subl(2 * N) * lanes(hdim) + subl(de) * lanes(hdim)
                       + subl(1) * lanes(hdim) + subl(hdim) * lanes(opad)
                       + subl(1) * lanes(opad))
    # Per-edge-row VMEM: two-hot + hidden temps, double-buffered ids/edge/out tiles.
    edge_row_bytes = 4 * (lanes(2 * N) + lanes(hdim)
                          + 2 * (lanes(2) + lanes(de) + lanes(opad)))
    # Stay comfortably under the smallest scoped-VMEM default (16 MiB on v5e).
    vmem_budget = max(2 << 20, (12 << 20) - const_bytes)
    tile_cap = max(8, (vmem_budget // edge_row_bytes) // 8 * 8)
    # >= 2 grid steps so both v7x TensorCores get work on the parallel axis.
    two_step_cap = _round_up(pl.cdiv(E, 2), 8)
    tile_e = max(8, min(tile_e, tile_cap, two_step_cap))
    tile_e = _round_up(tile_e, 8)
    e_pad = _round_up(E, tile_e)
    grid = (e_pad // tile_e,)

    # Merged per-edge id stream: [row, N + col]; padded tail rows select node 0
    # harmlessly and are sliced off at the end.
    ids = jnp.stack([row, col + N], axis=1)                    # (E, 2)
    ids_p = jnp.pad(ids, ((0, e_pad - E), (0, 0)))
    ea_p = jnp.pad(edge_attr, ((0, e_pad - E), (0, 0)))

    flops = 2 * e_pad * (2 * N * hdim + de * hdim + hdim * opad)
    bytes_accessed = 4 * (ids_p.size + ea_p.size + p.size + w1_e.size
                          + b1.size + w2_p.size + b2_p.size + e_pad * opad)
    cost = pl.CostEstimate(flops=flops, transcendentals=0,
                           bytes_accessed=bytes_accessed)

    _full = lambda i: (0, 0)

    def _call(const_pipeline_mode):
        if const_pipeline_mode is None:
            const_spec = lambda shape: pl.BlockSpec(shape, _full)
        else:
            const_spec = lambda shape: pl.BlockSpec(
                shape, _full, pipeline_mode=const_pipeline_mode)
        return pl.pallas_call(
            _edge_mlp_kernel,
            out_shape=jax.ShapeDtypeStruct((e_pad, opad), node_feats.dtype),
            grid_spec=pltpu.PrefetchScalarGridSpec(
                num_scalar_prefetch=0,
                grid=grid,
                in_specs=[
                    pl.BlockSpec((tile_e, 2), lambda i: (i, 0)),    # [row, N+col] ids
                    pl.BlockSpec((tile_e, de), lambda i: (i, 0)),   # edge_attr tile
                    const_spec((2 * N, hdim)),                      # P = [nf@W1u; nf@W1v]
                    const_spec((de, hdim)),                         # W1 rows for edge_attr
                    const_spec((1, hdim)),                          # b1
                    const_spec((hdim, opad)),                       # W2 (lane-padded)
                    const_spec((1, opad)),                          # b2 (lane-padded)
                ],
                out_specs=pl.BlockSpec((tile_e, opad), lambda i: (i, 0)),
            ),
            compiler_params=pltpu.CompilerParams(
                dimension_semantics=("parallel",)),
            cost_estimate=cost,
        )(ids_p, ea_p, p, w1_e, b1, w2_p, b2_p)

    try:
        # Constant-index operands don't benefit from double buffering.
        out = _call(pl.Buffered(1))
    except Exception:
        # Fallback for jax versions where BlockSpec.pipeline_mode is unsupported.
        out = _call(None)

    return out[:E, :odim]


def edge_model_ref(node_feats, edge_index, edge_attr, params):
    """Pure-JAX reference mirroring the PyTorch forward exactly."""
    row, col = edge_index[0], edge_index[1]
    x = jnp.concatenate([node_feats[row], node_feats[col], edge_attr], axis=1)
    h = jnp.maximum(x @ params["w1"] + params["b1"], 0.0)
    return jnp.maximum(h @ params["w2"] + params["b2"], 0.0)


def init_params(key, dn, de, hdim, odim):
    din = 2 * dn + de
    k1, k2, k3, k4 = jax.random.split(key, 4)
    return {
        "w1": 0.1 * jax.random.normal(k1, (din, hdim), jnp.float32),
        "b1": 0.1 * jax.random.normal(k2, (1, hdim), jnp.float32),
        "w2": 0.1 * jax.random.normal(k3, (hdim, odim), jnp.float32),
        "b2": 0.1 * jax.random.normal(k4, (1, odim), jnp.float32),
    }


if __name__ == "__main__":
    # Small shapes consistent with the module: N nodes, E edges.
    N, E = 24, 40
    DN, DE = 32, 16        # node / edge feature dims
    HID, OUT = 64, 16      # edge_model MLP dims

    key = jax.random.PRNGKey(0)
    k_node, k_edge, k_idx, k_par = jax.random.split(key, 4)

    node_feats = jax.random.normal(k_node, (N, DN), jnp.float32)
    edge_attr = jax.random.normal(k_edge, (E, DE), jnp.float32)
    edge_index = jax.random.randint(k_idx, (2, E), 0, N, dtype=jnp.int32)
    params = init_params(k_par, DN, DE, HID, OUT)

    # tile_e=16 exercises multiple grid steps + tail padding at toy sizes;
    # default is 2048 (VMEM/step-count clamped) for realistic edge counts.
    out = edge_model_forward(node_feats, edge_index, edge_attr, params, tile_e=16)
    out = jax.block_until_ready(out)

    ref = edge_model_ref(node_feats, edge_index, edge_attr, params)
    assert out.shape == (E, OUT)
    assert jnp.allclose(out, ref, atol=1e-4, rtol=1e-4), "mismatch vs JAX reference"

    print("KERNEL_OK")
</pallas_src>

<mosaic_0001>
module attributes {stable_mosaic.version = 11 : i64} {
  func.func @_edge_mlp_kernel(%arg0: i32, %arg1: memref<16x2xi32, #tpu.memory_space<vmem>>, %arg2: memref<16x16xf32, #tpu.memory_space<vmem>>, %arg3: memref<48x64xf32, #tpu.memory_space<vmem>>, %arg4: memref<16x64xf32, #tpu.memory_space<vmem>>, %arg5: memref<1x64xf32, #tpu.memory_space<vmem>>, %arg6: memref<64x128xf32, #tpu.memory_space<vmem>>, %arg7: memref<1x128xf32, #tpu.memory_space<vmem>>, %arg8: memref<16x128xf32, #tpu.memory_space<vmem>>) attributes {dimension_semantics = [#tpu.dimension_semantics<parallel>], iteration_bounds = array<i64: 3>, scalar_prefetch = 0 : i64, scratch_operands = 0 : i64, tpu.core_type = #tpu.core_type<tc>, window_params = [{transform_indices = @transform_0, window_bounds = array<i64: 16, 2>}, {transform_indices = @transform_1, window_bounds = array<i64: 16, 16>}, {pipeline_mode = #tpu.pipeline_mode<synchronous>, transform_indices = @transform_2, window_bounds = array<i64: 48, 64>}, {pipeline_mode = #tpu.pipeline_mode<synchronous>, transform_indices = @transform_3, window_bounds = array<i64: 16, 64>}, {pipeline_mode = #tpu.pipeline_mode<synchronous>, transform_indices = @transform_4, window_bounds = array<i64: 1, 64>}, {pipeline_mode = #tpu.pipeline_mode<synchronous>, transform_indices = @transform_5, window_bounds = array<i64: 64, 128>}, {pipeline_mode = #tpu.pipeline_mode<synchronous>, transform_indices = @transform_6, window_bounds = array<i64: 1, 128>}, {transform_indices = @transform_7, window_bounds = array<i64: 16, 128>}]} {
    %c0 = arith.constant 0 : index
    %c0_0 = arith.constant 0 : index
    %0 = vector.load %arg1[%c0, %c0_0] : memref<16x2xi32, #tpu.memory_space<vmem>>, vector<16x2xi32>
    %1 = tpu.iota {dimensions = array<i32: 1>} : vector<16x48xi32>
    %2 = vector.extract_strided_slice %0 {offsets = [0, 0], sizes = [16, 1], strides = [1, 1]} : vector<16x2xi32> to vector<16x1xi32>
    %3 = vector.broadcast %2 : vector<16x1xi32> to vector<16x48xi32>
    %4 = arith.cmpi eq, %1, %3 : vector<16x48xi32>
    %5 = vector.extract_strided_slice %0 {offsets = [0, 1], sizes = [16, 1], strides = [1, 1]} : vector<16x2xi32> to vector<16x1xi32>
    %6 = vector.broadcast %5 : vector<16x1xi32> to vector<16x48xi32>
    %7 = arith.cmpi eq, %1, %6 : vector<16x48xi32>
    %8 = arith.ori %4, %7 : vector<16x48xi1>
    %9 = arith.extui %8 : vector<16x48xi1> to vector<16x48xi32>
    %10 = arith.sitofp %9 : vector<16x48xi32> to vector<16x48xf32>
    %c0_1 = arith.constant 0 : index
    %c0_2 = arith.constant 0 : index
    %11 = vector.load %arg3[%c0_1, %c0_2] : memref<48x64xf32, #tpu.memory_space<vmem>>, vector<48x64xf32>
    %cst = arith.constant dense<0.000000e+00> : vector<16x64xf32>
    %12 = tpu.matmul %10, %11, %cst {dimension_numbers = #tpu.dot_dimension_numbers<[1], [0], [0], [1], [0, 0, 1, 1], [], []>, precision = #tpu.contract_precision<fp32>} : vector<16x48xf32>, vector<48x64xf32>, vector<16x64xf32> -> vector<16x64xf32>
    %c0_3 = arith.constant 0 : index
    %c0_4 = arith.constant 0 : index
    %13 = vector.load %arg2[%c0_3, %c0_4] : memref<16x16xf32, #tpu.memory_space<vmem>>, vector<16x16xf32>
    %c0_5 = arith.constant 0 : index
    %c0_6 = arith.constant 0 : index
    %14 = vector.load %arg4[%c0_5, %c0_6] : memref<16x64xf32, #tpu.memory_space<vmem>>, vector<16x64xf32>
    %cst_7 = arith.constant dense<0.000000e+00> : vector<16x64xf32>
    %15 = tpu.matmul %13, %14, %cst_7 {dimension_numbers = #tpu.dot_dimension_numbers<[1], [0], [0], [1], [0, 0, 1, 1], [], []>} : vector<16x16xf32>, vector<16x64xf32>, vector<16x64xf32> -> vector<16x64xf32>
    %16 = arith.addf %12, %15 : vector<16x64xf32>
    %c0_8 = arith.constant 0 : index
    %c0_9 = arith.constant 0 : index
    %17 = vector.load %arg5[%c0_8, %c0_9] : memref<1x64xf32, #tpu.memory_space<vmem>>, vector<1x64xf32>
    %18 = vector.broadcast %17 : vector<1x64xf32> to vector<16x64xf32>
    %19 = arith.addf %16, %18 : vector<16x64xf32>
    %cst_10 = arith.constant 0.000000e+00 : f32
    %20 = vector.broadcast %cst_10 : f32 to vector<16x64xf32>
    %21 = arith.maximumf %19, %20 : vector<16x64xf32>
    %c0_11 = arith.constant 0 : index
    %c0_12 = arith.constant 0 : index
    %22 = vector.load %arg6[%c0_11, %c0_12] : memref<64x128xf32, #tpu.memory_space<vmem>>, vector<64x128xf32>
    %cst_13 = arith.constant dense<0.000000e+00> : vector<16x128xf32>
    %23 = tpu.matmul %21, %22, %cst_13 {dimension_numbers = #tpu.dot_dimension_numbers<[1], [0], [0], [1], [0, 0, 1, 1], [], []>} : vector<16x64xf32>, vector<64x128xf32>, vector<16x128xf32> -> vector<16x128xf32>
    %c0_14 = arith.constant 0 : index
    %c0_15 = arith.constant 0 : index
    %24 = vector.load %arg7[%c0_14, %c0_15] : memref<1x128xf32, #tpu.memory_space<vmem>>, vector<1x128xf32>
    %25 = vector.broadcast %24 : vector<1x128xf32> to vector<16x128xf32>
    %26 = arith.addf %23, %25 : vector<16x128xf32>
    %cst_16 = arith.constant 0.000000e+00 : f32
    %27 = vector.broadcast %cst_16 : f32 to vector<16x128xf32>
    %28 = arith.maximumf %26, %27 : vector<16x128xf32>
    %c0_17 = arith.constant 0 : index
    %c0_18 = arith.constant 0 : index
    %29 = vector.load %arg8[%c0_17, %c0_18] : memref<16x128xf32, #tpu.memory_space<vmem>>, vector<16x128xf32>
    tpu.vector_store %arg8[%c0_17, %c0_18], %28 {strides = array<i32>} : memref<16x128xf32, #tpu.memory_space<vmem>>, vector<16x128xf32>,
    return
  }
  func.func @transform_0(%arg0: i32) -> (i32, i32) {
    %c0_i32 = arith.constant 0 : i32
    %c0_i32_0 = arith.constant 0 : i32
    return %arg0, %c0_i32 : i32, i32
  }
  func.func @transform_1(%arg0: i32) -> (i32, i32) {
    %c0_i32 = arith.constant 0 : i32
    %c0_i32_0 = arith.constant 0 : i32
    return %arg0, %c0_i32 : i32, i32
  }
  func.func @transform_2(%arg0: i32) -> (i32, i32) {
    %c0_i32 = arith.constant 0 : i32
    %c0_i32_0 = arith.constant 0 : i32
    %c0_i32_1 = arith.constant 0 : i32
    return %c0_i32, %c0_i32_0 : i32, i32
  }
  func.func @transform_3(%arg0: i32) -> (i32, i32) {
    %c0_i32 = arith.constant 0 : i32
    %c0_i32_0 = arith.constant 0 : i32
    %c0_i32_1 = arith.constant 0 : i32
    return %c0_i32, %c0_i32_0 : i32, i32
  }
  func.func @transform_4(%arg0: i32) -> (i32, i32) {
    %c0_i32 = arith.constant 0 : i32
    %c0_i32_0 = arith.constant 0 : i32
    %c0_i32_1 = arith.constant 0 : i32
    return %c0_i32, %c0_i32_0 : i32, i32
  }
  func.func @transform_5(%arg0: i32) -> (i32, i32) {
    %c0_i32 = arith.constant 0 : i32
    %c0_i32_0 = arith.constant 0 : i32
    %c0_i32_1 = arith.constant 0 : i32
    return %c0_i32, %c0_i32_0 : i32, i32
  }
  func.func @transform_6(%arg0: i32) -> (i32, i32) {
    %c0_i32 = arith.constant 0 : i32
    %c0_i32_0 = arith.constant 0 : i32
    %c0_i32_1 = arith.constant 0 : i32
    return %c0_i32, %c0_i32_0 : i32, i32
  }
  func.func @transform_7(%arg0: i32) -> (i32, i32) {
    %c0_i32 = arith.constant 0 : i32
    %c0_i32_0 = arith.constant 0 : i32
    return %arg0, %c0_i32 : i32, i32
  }
}

module attributes {stable_mosaic.version = 11 : i64} {
  func.func @_edge_mlp_kernel(%arg0: i32, %arg1: memref<16x2xi32, #tpu.memory_space<vmem>>, %arg2: memref<16x16xf32, #tpu.memory_space<vmem>>, %arg3: memref<48x64xf32, #tpu.memory_space<vmem>>, %arg4: memref<16x64xf32, #tpu.memory_space<vmem>>, %arg5: memref<1x64xf32, #tpu.memory_space<vmem>>, %arg6: memref<64x128xf32, #tpu.memory_space<vmem>>, %arg7: memref<1x128xf32, #tpu.memory_space<vmem>>, %arg8: memref<16x128xf32, #tpu.memory_space<vmem>>) attributes {dimension_semantics = [#tpu.dimension_semantics<parallel>], iteration_bounds = array<i64: 3>, scalar_prefetch = 0 : i64, scratch_operands = 0 : i64, tpu.core_type = #tpu.core_type<tc>, window_params = [{transform_indices = @transform_0, window_bounds = array<i64: 16, 2>}, {transform_indices = @transform_1, window_bounds = array<i64: 16, 16>}, {pipeline_mode = #tpu.pipeline_mode<synchronous>, transform_indices = @transform_2, window_bounds = array<i64: 48, 64>}, {pipeline_mode = #tpu.pipeline_mode<synchronous>, transform_indices = @transform_3, window_bounds = array<i64: 16, 64>}, {pipeline_mode = #tpu.pipeline_mode<synchronous>, transform_indices = @transform_4, window_bounds = array<i64: 1, 64>}, {pipeline_mode = #tpu.pipeline_mode<synchronous>, transform_indices = @transform_5, window_bounds = array<i64: 64, 128>}, {pipeline_mode = #tpu.pipeline_mode<synchronous>, transform_indices = @transform_6, window_bounds = array<i64: 1, 128>}, {transform_indices = @transform_7, window_bounds = array<i64: 16, 128>}]} {
    %c0 = arith.constant 0 : index
    %c0_0 = arith.constant 0 : index
    %0 = vector.load %arg1[%c0, %c0_0] : memref<16x2xi32, #tpu.memory_space<vmem>>, vector<16x2xi32>
    %1 = tpu.iota {dimensions = array<i32: 1>} : vector<16x48xi32>
    %2 = vector.extract_strided_slice %0 {offsets = [0, 0], sizes = [16, 1], strides = [1, 1]} : vector<16x2xi32> to vector<16x1xi32>
    %3 = vector.broadcast %2 : vector<16x1xi32> to vector<16x48xi32>
    %4 = arith.cmpi eq, %1, %3 : vector<16x48xi32>
    %5 = vector.extract_strided_slice %0 {offsets = [0, 1], sizes = [16, 1], strides = [1, 1]} : vector<16x2xi32> to vector<16x1xi32>
    %6 = vector.broadcast %5 : vector<16x1xi32> to vector<16x48xi32>
    %7 = arith.cmpi eq, %1, %6 : vector<16x48xi32>
    %8 = arith.ori %4, %7 : vector<16x48xi1>
    %9 = arith.extui %8 : vector<16x48xi1> to vector<16x48xi32>
    %10 = arith.sitofp %9 : vector<16x48xi32> to vector<16x48xf32>
    %c0_1 = arith.constant 0 : index
    %c0_2 = arith.constant 0 : index
    %11 = vector.load %arg3[%c0_1, %c0_2] : memref<48x64xf32, #tpu.memory_space<vmem>>, vector<48x64xf32>
    %cst = arith.constant dense<0.000000e+00> : vector<16x64xf32>
    %12 = tpu.matmul %10, %11, %cst {dimension_numbers = #tpu.dot_dimension_numbers<[1], [0], [0], [1], [0, 0, 1, 1], [], []>, precision = #tpu.contract_precision<fp32>} : vector<16x48xf32>, vector<48x64xf32>, vector<16x64xf32> -> vector<16x64xf32>
    %c0_3 = arith.constant 0 : index
    %c0_4 = arith.constant 0 : index
    %13 = vector.load %arg2[%c0_3, %c0_4] : memref<16x16xf32, #tpu.memory_space<vmem>>, vector<16x16xf32>
    %c0_5 = arith.constant 0 : index
    %c0_6 = arith.constant 0 : index
    %14 = vector.load %arg4[%c0_5, %c0_6] : memref<16x64xf32, #tpu.memory_space<vmem>>, vector<16x64xf32>
    %cst_7 = arith.constant dense<0.000000e+00> : vector<16x64xf32>
    %15 = tpu.matmul %13, %14, %cst_7 {dimension_numbers = #tpu.dot_dimension_numbers<[1], [0], [0], [1], [0, 0, 1, 1], [], []>} : vector<16x16xf32>, vector<16x64xf32>, vector<16x64xf32> -> vector<16x64xf32>
    %16 = arith.addf %12, %15 : vector<16x64xf32>
    %c0_8 = arith.constant 0 : index
    %c0_9 = arith.constant 0 : index
    %17 = vector.load %arg5[%c0_8, %c0_9] : memref<1x64xf32, #tpu.memory_space<vmem>>, vector<1x64xf32>
    %18 = vector.broadcast %17 : vector<1x64xf32> to vector<16x64xf32>
    %19 = arith.addf %16, %18 : vector<16x64xf32>
    %cst_10 = arith.constant 0.000000e+00 : f32
    %20 = vector.broadcast %cst_10 : f32 to vector<16x64xf32>
    %21 = arith.maximumf %19, %20 : vector<16x64xf32>
    %c0_11 = arith.constant 0 : index
    %c0_12 = arith.constant 0 : index
    %22 = vector.load %arg6[%c0_11, %c0_12] : memref<64x128xf32, #tpu.memory_space<vmem>>, vector<64x128xf32>
    %cst_13 = arith.constant dense<0.000000e+00> : vector<16x128xf32>
    %23 = tpu.matmul %21, %22, %cst_13 {dimension_numbers = #tpu.dot_dimension_numbers<[1], [0], [0], [1], [0, 0, 1, 1], [], []>} : vector<16x64xf32>, vector<64x128xf32>, vector<16x128xf32> -> vector<16x128xf32>
    %c0_14 = arith.constant 0 : index
    %c0_15 = arith.constant 0 : index
    %24 = vector.load %arg7[%c0_14, %c0_15] : memref<1x128xf32, #tpu.memory_space<vmem>>, vector<1x128xf32>
    %25 = vector.broadcast %24 : vector<1x128xf32> to vector<16x128xf32>
    %26 = arith.addf %23, %25 : vector<16x128xf32>
    %cst_16 = arith.constant 0.000000e+00 : f32
    %27 = vector.broadcast %cst_16 : f32 to vector<16x128xf32>
    %28 = arith.maximumf %26, %27 : vector<16x128xf32>
    %c0_17 = arith.constant 0 : index
    %c0_18 = arith.constant 0 : index
    %29 = vector.load %arg8[%c0_17, %c0_18] : memref<16x128xf32, #tpu.memory_space<vmem>>, vector<16x128xf32>
    tpu.vector_store %arg8[%c0_17, %c0_18], %28 {strides = array<i32>} : memref<16x128xf32, #tpu.memory_space<vmem>>, vector<16x128xf32>,
    return
  }
  func.func @transform_0(%arg0: i32) -> (i32, i32) {
    %c0_i32 = arith.constant 0 : i32
    %c0_i32_0 = arith.constant 0 : i32
    return %arg0, %c0_i32 : i32, i32
  }
  func.func @transform_1(%arg0: i32) -> (i32, i32) {
    %c0_i32 = arith.constant 0 : i32
    %c0_i32_0 = arith.constant 0 : i32
    return %arg0, %c0_i32 : i32, i32
  }
  func.func @transform_2(%arg0: i32) -> (i32, i32) {
    %c0_i32 = arith.constant 0 : i32
    %c0_i32_0 = arith.constant 0 : i32
    %c0_i32_1 = arith.constant 0 : i32
    return %c0_i32, %c0_i32_0 : i32, i32
  }
  func.func @transform_3(%arg0: i32) -> (i32, i32) {
    %c0_i32 = arith.constant 0 : i32
    %c0_i32_0 = arith.constant 0 : i32
    %c0_i32_1 = arith.constant 0 : i32
    return %c0_i32, %c0_i32_0 : i32, i32
  }
  func.func @transform_4(%arg0: i32) -> (i32, i32) {
    %c0_i32 = arith.constant 0 : i32
    %c0_i32_0 = arith.constant 0 : i32
    %c0_i32_1 = arith.constant 0 : i32
    return %c0_i32, %c0_i32_0 : i32, i32
  }
  func.func @transform_5(%arg0: i32) -> (i32, i32) {
    %c0_i32 = arith.constant 0 : i32
    %c0_i32_0 = arith.constant 0 : i32
    %c0_i32_1 = arith.constant 0 : i32
    return %c0_i32, %c0_i32_0 : i32, i32
  }
  func.func @transform_6(%arg0: i32) -> (i32, i32) {
    %c0_i32 = arith.constant 0 : i32
    %c0_i32_0 = arith.constant 0 : i32
    %c0_i32_1 = arith.constant 0 : i32
    return %c0_i32, %c0_i32_0 : i32, i32
  }
  func.func @transform_7(%arg0: i32) -> (i32, i32) {
    %c0_i32 = arith.constant 0 : i32
    %c0_i32_0 = arith.constant 0 : i32
    return %arg0, %c0_i32 : i32, i32
  }
}

</mosaic_0001>

<bundles_post_ra>
// kernel: tpu_custom_call.1
= control target key start
LH: loop header
LB: loop body
LE: loop exit
PB: predicated region body
PF: predicated region fallthrough
CT: control target
= control target key end

     0   :  { %12 = vsyncpa [#allocation3], 0  ;;  %s1863_s0 = inlined_call_operand.vmem [shape: s32[48,2], index: 0, kind: input, shape index: {}]   ;;  %s1864_s1 = inlined_call_operand.vmem [shape: f32[48,16], index: 1, kind: input, shape index: {}]   ;;  %s1865_s2 = inlined_call_operand.vmem [shape: f32[48,64], index: 2, kind: input, shape index: {}]   ;;  %s1866_s3 = inlined_call_operand.vmem [shape: f32[16,64], index: 3, kind: input, shape index: {}]   ;;  %s1867_s4 = inlined_call_operand.vmem [shape: f32[1,64], index: 4, kind: input, shape index: {}]   ;;  %s1868_s5 = inlined_call_operand.vmem [shape: f32[64,128], index: 5, kind: input, shape index: {}]   ;;  %s1869_s6 = inlined_call_operand.vmem [shape: f32[1,128], index: 6, kind: input, shape index: {}]   ;;  %s1870_s7 = inlined_call_operand.hbm [shape: f32[48,128], index: 7, kind: output, shape index: {}]  }
   0x1   :  { %14 = vsyncpa [#allocation3 + $0x1], 0  ;;  %s1650_s24 = smov 0   ;;  %s1652_s25 = smov 0  }
   0x2   :  { %s1654_s26 = smov 0   ;;  %s1656_s27 = smov 0  }
   0x3 LB: > { %s1671_s28 = sadd.s32 4294967295, %s1602_s27   ;;  %s1181_s29 = sadd.s32 4294967294, %s1602_s27   ;;  %s1602_s27 = sphi %s1656_s27, %s1876_s27   ;;  %s1598_s26 = sphi %s1654_s26, %s1875_s26   ;;  %s1594_s25 = sphi %s1652_s25, %s1874_s25   ;;  %s1590_s24 = sphi %s1650_s24, %s1873_s24  }
   0x4   : > { %s1675_s30 = sadd.s32 1, %s1602_s27   ;;  %s184_s8 = sadd.s32 1, %s1598_s26 }
   0x5   : > { %s181_s9 = ssub.s32 %s1602_s27, %s1675_s30  ;;  %p194_p0 = scmp.ne.s32.totalorder %s1598_s26, %s1594_s25 }
   0x6   : > { %p182_p1 = scmp.eq.s32.totalorder %s181_s9, 0  ;;  %p195_p2 = scmp.eq.s32.totalorder %s1671_s28, 2 }
   0x7   : > { %p200_p3 = scmp.ne.s32.totalorder %s1594_s25, %s1590_s24  ;;  %p201_p4 = scmp.eq.s32.totalorder %s1181_s29, 2 }
   0x8   : > { %s1686_s10 = scalar_select %p182_p1, %s1598_s26, %s184_s8  }
   0x9   : > { %p1688_p5 = por %p195_p2, %p194_p0  ;;  %p1692_p6 = por %p201_p4, %p200_p3 }
   0xa   : > { %p1184_p7 = scmp.ge.s32.totalorder %s1602_s27, 1  ;;  %p252_p8 = scmp.lt.s32.totalorder %s1602_s27, 4 }
   0xc   : > { %p253_p9 = pnand %p1184_p7, %p252_p8 }
   0xd   : > { %s1186_s13 = sshll.u32 (!%p253_p9), %s1671_s28, 1  ;;  %v328_v0 = vld [vmem:[%s1865_s2] sm:$0xff] (!%p253_p9)  ;;  %v329_v1 = vld [vmem:[%s1865_s2 + $0x8] sm:$0xff] (!%p253_p9)  ;;  %v1604_v2 = vmov (!%p253_p9), 0   ;;  %v330_v7 = vld [vmem:[%s1865_s2 + $0x10] sm:$0xff] (!%p253_p9)  ;;  %v1605_v25 = vmov (!%p253_p9), 1   ;;  %v304_v57 = vlaneseq (!%p253_p9) }
   0xe   : > { %256 = sbr.rel (%p253_p9) target bundleno = 654 (0x28e), region = 48  ;;  %1538 = vset.pattern.permute.xlu1 (!%p253_p9), %v1604_v2  ;;  %1536 = vset.pattern.permute.xlu0 (!%p253_p9), %v1604_v2  ;;  %p290_p10 = scmp.lt.s32.totalorder (!%p253_p9), %s1186_s13, 5  ;;  %v428_v3 = vand.u32 (!%p253_p9), 4294901760, %v328_v0  ;;  %v431_v4 = vand.u32 (!%p253_p9), 4294901760, %v329_v1  ;;  %v331_v8 = vld [vmem:[%s1865_s2 + $0x18] sm:$0xff] (!%p253_p9)  ;;  %v434_v10 = vand.u32 (!%p253_p9), 4294901760, %v330_v7 }
   0xf   : > { %v437_v11 = vand.u32 (!%p253_p9), 4294901760, %v331_v8  ;;  %v336_v12 = vld [vmem:[%s1866_s3] sm:$0xff] (!%p253_p9)  ;;  %v337_v13 = vld [vmem:[%s1866_s3 + $0x8] sm:$0xff] (!%p253_p9)  ;;  %vm338_vm0 = vcmask (!%p253_p9), 130048   ;;  %v305_v60 = vand.u32 (!%p253_p9), 127, %v304_v57  ;;  %vm420_vm4 = vcmask (!%p253_p9), 392192  }
  0x10   : > { %v1707_v5 = vsub.f32 (!%p253_p9), %v328_v0, %v428_v3  ;;  %v1709_v6 = vsub.f32 (!%p253_p9), %v329_v1, %v431_v4  ;;  %v1731_v16 = vpack.c.bf16 (!%p253_p9), %v431_v4, %v428_v3  ;;  %v1388_v17 = vpack.c.bf16 (!%p253_p9), %v337_v13, %v336_v12  ;;  %v332_v21 = vld [vmem:[%s1865_s2 + $0x20] sm:$0xff] (!%p253_p9)  ;;  %v333_v22 = vld [vmem:[%s1865_s2 + $0x28] sm:$0xff] (!%p253_p9)  ;;  %s286_s14 = sand.u32 (!%p253_p9), 1, %s1594_s25   ;;  %s1209_s20 = sshll.u32 (!%p253_p9), %s1671_s28, 8 }
  0x11   : > { %v1733_v18 = vsub.f32 (!%p253_p9), %v330_v7, %v434_v10  ;;  %v541_v19 = vsub.f32 (!%p253_p9), %v331_v8, %v437_v11  ;;  %v440_v23 = vand.u32 (!%p253_p9), 4294901760, %v332_v21  ;;  %v443_v24 = vand.u32 (!%p253_p9), 4294901760, %v333_v22  ;;  %v992_v12 = vld [vmem:[%s1868_s5] sm:$0xff] (!%p253_p9)  ;;  %v993_v13 = vld [vmem:[%s1868_s5 + $0x8] sm:$0xff] (!%p253_p9)  ;;  %s1185_s15 = sshll.u32 (!%p253_p9), %s286_s14, 4 }
  0x12   : > { %v1416_v9 = vpack.c.bf16 (!%p253_p9), %v1709_v6, %v1707_v5  ;;  %1389 = vmatprep.subr.bf16.mxu1 (!%p253_p9), %v1388_v17  ;;  %v1748_v28 = vpack.c.bf16 (!%p253_p9), %v437_v11, %v434_v10  ;;  %v521_v33 = vand.u32 (!%p253_p9), 4294901760, %v1707_v5  ;;  %v528_v34 = vand.u32 (!%p253_p9), 4294901760, %v1709_v6  ;;  %s288_s18 = scalar_lea.vmem (!%p253_p9), [#allocation2], %s1185_s15 }
  0x13   : > { %v1420_v20 = vpack.c.bf16 (!%p253_p9), %v541_v19, %v1733_v18  ;;  %1391 = vmatpush3.bf16.msra.mxu1 (!%p253_p9), %v1388_v17  ;;  %v548_v26 = vsub.f32 (!%p253_p9), %v332_v21, %v440_v23  ;;  %v555_v27 = vsub.f32 (!%p253_p9), %v333_v22, %v443_v24  ;;  %v1751_v32 = vpack.c.bf16 (!%p253_p9), %v443_v24, %v440_v23  ;;  %v998_v21 = vld [vmem:[%s1868_s5 + $0x30] sm:$0xff] (!%p253_p9)  ;;  %v999_v22 = vld [vmem:[%s1868_s5 + $0x38] sm:$0xff] (!%p253_p9)  ;;  %s1107_s19 = sshll.u32 (!%p253_p9), %s288_s18, 4  ;;  %s1815_s19 = int_to_ptr.vmem [resolvable:$true] %s1107_s19 }
  0x14   : > { %1417 = vmatprep.subr.bf16.mxu0 (!%p253_p9), %v1416_v9  ;;  %1393 = vmatprep.subr.bf16.mxu1 (!%p253_p9), %v1731_v16  ;;  %v522_v35 = vsub.f32 (!%p253_p9), %v1707_v5, %v521_v33  ;;  %v529_v36 = vsub.f32 (!%p253_p9), %v1709_v6, %v528_v34  ;;  %v535_v39 = vand.u32 (!%p253_p9), 4294901760, %v1733_v18  ;;  %v542_v40 = vand.u32 (!%p253_p9), 4294901760, %v541_v19  ;;  %s1540_s28 = scalar_lea.vmem (!%p253_p9), %s1815_s19, 256 }
  0x15   : > { %s1878_s13 = smov (!%p290_p10, %s1186_s13), 5  ;;  %1419 = vmatpush3.bf16.msra.mxu0 %v1416_v9  ;;  %v1424_v31 = vpack.c.bf16 %v555_v27, %v548_v26  ;;  %v549_v46 = vand.u32 4294901760, %v548_v26  ;;  %v556_v47 = vand.u32 4294901760, %v555_v27  ;;  %v1440_v51 = vpack.c.bf16 %v528_v34, %v521_v33  ;;  %p1541_p11 = scmp.ne.s32.totalorder %s1815_s19, %s1540_s28 }
  0x16   : > { %s1187_s22 = sshll.u32 %s1878_s13, 3  ;;  %1421 = vmatprep.subr.bf16.mxu0 %v1420_v20  ;;  %v523_v37 = vand.u32 4294901760, %v522_v35  ;;  %v530_v38 = vand.u32 4294901760, %v529_v36  ;;  %v536_v42 = vsub.f32 %v1733_v18, %v535_v39  ;;  %v543_v43 = vsub.f32 %v541_v19, %v542_v40  ;;  %v996_v18 = vld [vmem:[%s1868_s5 + $0x20] sm:$0xff]  ;;  %v997_v19 = vld [vmem:[%s1868_s5 + $0x28] sm:$0xff]  ;;  %s1822_s13 = scalar_lea.sflag [#allocation3], %s286_s14 }
  0x17   : > { %s293_s8 = scalar_lea.vmem %s1863_s0, %s1187_s22  ;;  %s299_s29 = scalar_lea.vmem %s1864_s1, %s1187_s22  ;;  %v550_v49 = vsub.f32 %v548_v26, %v549_v46  ;;  %v557_v50 = vsub.f32 %v555_v27, %v556_v47  ;;  %v1444_v55 = vpack.c.bf16 %v542_v40, %v535_v39  ;;  %v1448_v56 = vpack.c.bf16 %v556_v47, %v549_v46  ;;  %v1200_v27 = vld [vmem:[%s1867_s4] ss:$0 sm:$0xff] }
  0x18   : > { %v303_v14 = vld [vmem:[%s293_s8 + $0x8] sm:$0xff]  ;;  %v302_v15 = vld [vmem:[%s293_s8] sm:$0xff]  ;;  %v1404_v41 = vpack.c.bf16 %v530_v38, %v523_v37  ;;  %v537_v44 = vand.u32 4294901760, %v536_v42  ;;  %v544_v45 = vand.u32 4294901760, %v543_v43  ;;  %v1606_v63 = vmov 0.0   ;;  %p1542_p12 = pnand %p1541_p11, %p1688_p5  ;;  %s1607_s22 = smov [#allocation2]  }
  0x19   : > { %310 = vperm.xlu1 %1538, %v303_v14   ;;  %307 = vperm.xlu0 %1536, %v302_v15   ;;  %v334_v29 = vld [vmem:[%s299_s29] sm:$0xff]  ;;  %v335_v30 = vld [vmem:[%s299_s29 + $0x8] sm:$0xff]  ;;  %v551_v52 = vand.u32 4294901760, %v550_v49  ;;  %v558_v53 = vand.u32 4294901760, %v557_v50  ;;  %v1476_v23 = vpack.c.bf16 %v999_v22, %v998_v21  ;;  %vm1007_vm8 = vcmask 523264   ;;  %s1820_s29 = scalar_lea.hbm %s1870_s7, %s1209_s20  ;;  %s1544_s8 = sshll.u32 %s1607_s22, 4  ;;  %s1545_s8 = int_to_ptr.vmem [resolvable:$false] %s1544_s8 }
  0x1a   : > { %1423 = vmatpush3.bf16.msra.mxu0 %v1420_v20  ;;  %1276 = vmatprep.mubr.msk.f32.mxu1 %vm338_vm0, %v334_v29  ;;  %v1408_v48 = vpack.c.bf16 %v544_v45, %v537_v44  ;;  %v1472_v20 = vpack.c.bf16 %v997_v19, %v996_v18  ;;  %v1201_v35 = vld [vmem:[%s1869_s6] ss:$0 sm:$0xff]  ;;  %p1543_p13 = pneg %p1542_p12  ;;  %s1546_s9 = scalar_lea.vmem %s1545_s8, 512 }
  0x1b   : > { %1277 = vmatmul.mubr.msk.f32.vlgmr.msra.gmra.mrb[0].mxu1 %vm338_vm0, %v335_v30  ;;  %1425 = vmatprep.subr.bf16.mxu0 %v1424_v31  ;;  %v1412_v54 = vpack.c.bf16 %v558_v53, %v551_v52  ;;  %p1547_p0 = scmp.lt.s32.totalorder %s1815_s19, %s1545_s8  ;;  %p1548_p1 = scmp.lt.s32.totalorder %s1546_s9, %s1540_s28 }
  0x1c   : > { %1395 = vmatpush3.bf16.msra.mxu1 %v1731_v16 }
  0x1d   : > { %1539 = vset.pattern.permute.xlu1 %v1605_v25  ;;  %1537 = vset.pattern.permute.xlu0 %v1605_v25  ;;  %p1549_p2 = por %p1548_p1, %p1547_p0 }
  0x1e   : > { %318 = vperm.xlu1 %1539, %v303_v14   ;;  %315 = vperm.xlu0 %1537, %v302_v15   ;;  %v994_v14 = vld [vmem:[%s1868_s5 + $0x10] sm:$0xff]  ;;  %v1464_v15 = vpack.c.bf16 %v993_v13, %v992_v12 }
  0x1f   : > { %1397 = vmatprep.subr.bf16.mxu1 %v1748_v28  ;;  %1427 = vmatpush3.bf16.msra.mxu0 %v1424_v31  ;;  %p1550_p3 = pnand %p1549_p2, %p1543_p13 }
  0x20   : > { %1429 = vmatprep.subr.bf16.mxu0 %v1731_v16  ;;  %1399 = vmatpush3.bf16.msra.mxu1 %v1748_v28 }
  0x21   : > { %1401 = vmatprep.subr.bf16.mxu1 %v1751_v32 }
  0x24   : > { %1403 = vmatpush3.bf16.msra.mxu1 %v1751_v32 }
  0x25   : > { %1405 = vmatprep.subr.bf16.mxu1 %v1404_v41 }
  0x98   : > { %v308_v58 = vpop.permute.xlu0 %307  ;;  %v311_v59 = vpop.permute.xlu1 %310 }
  0x99   : > { %vm313_vm1 = vcmp.eq.s32.totalorder %v305_v60, %v311_v59  ;;  %vm312_vm5 = vcmp.eq.s32.totalorder %v305_v60, %v308_v58 }
  0x9d   : > { %v319_v61 = vpop.permute.xlu1 %318  ;;  %v316_v62 = vpop.permute.xlu0 %315 }
  0x9e   : > { %vm321_vm2 = vcmp.eq.s32.totalorder %v305_v60, %v319_v61  ;;  %vm320_vm3 = vcmp.eq.s32.totalorder %v305_v60, %v316_v62 }
  0x9f   : > { %vm323_vm6 = vmor %vm313_vm1, %vm321_vm2 }
  0xa0   : > { %v1191_v0 = vsel %vm323_vm6, 1.0, %v1606_v63  ;;  %vm322_vm7 = vmor %vm312_vm5, %vm320_vm3 }
  0xa1   : > { %v1190_v1 = vsel %vm322_vm7, 1.0, %v1606_v63  ;;  %v425_v2 = vsel %vm420_vm4, %v1191_v0, 0 }
  0xa2   : > { %v422_v3 = vsel %vm420_vm4, %v1190_v1, 0  ;;  %v509_v4 = vsub.f32 %v425_v2, %v425_v2 }
  0xa3   : > { %v499_v5 = vsub.f32 %v422_v3, %v422_v3 }
  0xa4   : > { %v510_v6 = vand.u32 4294901760, %v509_v4 }
  0xa5   : > { %1321 = vmatprep.mubr.f32.mxu0 %v499_v5  ;;  %v500_v7 = vand.u32 4294901760, %v499_v5 }
  0xa6   : > { %1322 = vmatmul.mubr.f32.vlgmr.msra.gmra.mrb[0].mxu0 %v509_v4  ;;  %v511_v8 = vsub.f32 %v509_v4, %v510_v6 }
  0xa7   : > { %1431 = vmatpush3.bf16.msra.mxu0 %v1731_v16  ;;  %1336 = vmatprep.mubr.f32.mxu0 %v500_v7  ;;  %v501_v9 = vsub.f32 %v499_v5, %v500_v7 }
  0xa8   : > { %1433 = vmatprep.subr.bf16.mxu0 %v1748_v28  ;;  %v512_v10 = vand.u32 4294901760, %v511_v8 }
  0xa9   : > { %v502_v11 = vand.u32 4294901760, %v501_v9 }
  0xab   : > { %1435 = vmatpush3.bf16.msra.mxu0 %v1748_v28  ;;  %1291 = vmatprep.mubr.f32.mxu1 %v502_v11 }
  0xac   : > { %1292 = vmatmul.mubr.f32.vlgmr.msra.gmra.mrb[0].mxu1 %v512_v10  ;;  %1437 = vmatprep.subr.bf16.mxu0 %v1751_v32 }
  0xad   : > { %1407 = vmatpush3.bf16.msra.mxu1 %v1404_v41  ;;  %1306 = vmatprep.mubr.msk.f32.mxu1 %vm420_vm4, %v1190_v1 }
  0xae   : > { %1409 = vmatprep.subr.bf16.mxu1 %v1408_v48 }
  0xaf   : > { %1439 = vmatpush3.bf16.msra.mxu0 %v1751_v32 }
  0xb0   : > { %1441 = vmatprep.subr.bf16.mxu0 %v1440_v51 }
  0xb1   : > { %1411 = vmatpush3.bf16.msra.mxu1 %v1408_v48 }
  0xb2   : > { %1337 = vmatmul.mubr.f32.vlgmr.msra.gmra.mrb[0].mxu0 %v510_v6  ;;  %1413 = vmatprep.subr.bf16.mxu1 %v1412_v54 }
  0xb3   : > { %1443 = vmatpush3.bf16.msra.mxu0 %v1440_v51  ;;  %1351 = vmatprep.mubr.msk.f32.mxu0 %vm420_vm4, %v1190_v1 }
  0xb4   : > { %1445 = vmatprep.subr.bf16.mxu0 %v1444_v55 }
  0xb5   : > { %1415 = vmatpush3.bf16.msra.mxu1 %v1412_v54 }
  0xb6   : > { %1465 = vmatprep.subr.bf16.mxu1 %v1464_v15 }
  0xb7   : > { %1447 = vmatpush3.bf16.msra.mxu0 %v1444_v55 }
  0xb8   : > { %1307 = vmatmul.mubr.msk.f32.vlgmr.msra.gmra.mrb[0].mxu1 %vm420_vm4, %v1191_v0  ;;  %1449 = vmatprep.subr.bf16.mxu0 %v1448_v56 }
  0xb9   : > { %1467 = vmatpush3.bf16.msra.mxu1 %v1464_v15 }
  0xbb   : > { %1451 = vmatpush3.bf16.msra.mxu0 %v1448_v56 }
  0xbc   : > { %1453 = vmatprep.subr.bf16.mxu0 %v1731_v16 }
  0xbe   : > { %1352 = vmatmul.mubr.msk.f32.vlgmr.msra.gmra.mrb[0].mxu0 %vm420_vm4, %v1191_v0 }
  0xbf   : > { %1455 = vmatpush3.bf16.msra.mxu0 %v1731_v16  ;;  %1366 = vmatprep.mubr.msk.f32.mxu0 %vm420_vm4, %v1190_v1  ;;  %v995_v16 = vld [vmem:[%s1868_s5 + $0x18] sm:$0xff] }
  0xc0   : > { %1457 = vmatprep.subr.bf16.mxu0 %v1748_v28  ;;  %v1468_v17 = vpack.c.bf16 %v995_v16, %v994_v14 }
  0xc2   : > { %1469 = vmatprep.subr.bf16.mxu1 %v1468_v17 }
  0xc3   : > { %1459 = vmatpush3.bf16.msra.mxu0 %v1748_v28  ;;  %1471 = vmatpush3.bf16.msra.mxu1 %v1468_v17 }
  0xc4   : > { %1461 = vmatprep.subr.bf16.mxu0 %v1751_v32  ;;  %1473 = vmatprep.subr.bf16.mxu1 %v1472_v20 }
  0xc7   : > { %1463 = vmatpush3.bf16.msra.mxu0 %v1751_v32  ;;  %1475 = vmatpush3.bf16.msra.mxu1 %v1472_v20 }
  0xc8   : > { %1477 = vmatprep.subr.bf16.mxu1 %v1476_v23 }
  0xca   : > { %1367 = vmatmul.mubr.msk.f32.vlgmr.msra.gmra.mrb[0].mxu0 %vm420_vm4, %v1191_v0 }
  0xcb   : > { %1479 = vmatpush3.bf16.msra.mxu1 %v1476_v23 }
 0x18b   : > { %v1308_v24 = vpop.f32.mrb[0].mxu1 }
 0x18c   : > { %v615_v25 = vpop.f32.mrb[1].mxu1 }
 0x19d   : > { %v1368_v26 = vpop.f32.mrb[0].mxu0 }
 0x19e   : > { %v1480_v28 = vadd.f32 %v1368_v26, %v1308_v24  ;;  %v971_v29 = vpop.f32.mrb[1].mxu0 }
 0x19f   : > { %v1481_v30 = vadd.f32 %v971_v29, %v615_v25 }
 0x1a0   : > { %v989_v31 = vadd.f32 %v1480_v28, %v1200_v27 }
 0x1a1   : > { %v988_v32 = vadd.f32 %v1481_v30, %v1200_v27 }
 0x1a2   : > { %v991_v34 = vmax.f32 %v989_v31, 0.0 }
 0x1a3   : > { %v990_v33 = vmax.f32 %v988_v32, 0.0 }
 0x1a5   : > { %1385 = vmatprep.mubr.msk.f32.mxu1 %vm1007_vm8, %v990_v33 }
 0x1a6   : > { %1386 = vmatmul.mubr.msk.f32.vlgmr.msra.gmra.mrb[2].mxu1 %vm1007_vm8, %v991_v34 }
 0x279   : > { %v1387_v36 = vpop.f32.mrb[2].mxu1 }
 0x27a   : > { %v1086_v37 = vadd.f32 %v1387_v36, %v1201_v35  ;;  %v1080_v38 = vpop.f32.mrb[3].mxu1 }
 0x27b   : > { %v1081_v39 = vadd.f32 %v1201_v35, %v1080_v38 }
 0x27c   : > { %v1090_v40 = vmax.f32 %v1086_v37, 0.0 }
 0x27d   : > { %v1089_v41 = vmax.f32 %v1081_v39, 0.0 }
 0x27e   : > { %1092 = vst [vmem:[%s288_s18 + $0x8] sm:$0xff] %v1090_v40 }
 0x27f   : > { %1091 = vst [vmem:[%s288_s18] sm:$0xff] %v1089_v41 }
 0x280   : > { %1553 = shalt.err (!%p1550_p3)
}
 0x281   : > { %s1554_s14 = scalar_lea.hbm %s1820_s29, 256  ;;  %s1558_s17 = scalar_lea.hbm %s1870_s7, 768 }
 0x282   : > { %p1555_p4 = scmp.ne.s32.totalorder %s1820_s29, %s1554_s14  ;;  %p1559_p9 = scmp.lt.u32.totalorder %s1820_s29, %s1870_s7 }
 0x283   : > { %p1560_p10 = scmp.lt.u32.totalorder %s1558_s17, %s1554_s14  ;;  %p1562_p12 = scmp.lt.u32.totalorder %s1554_s14, %s1820_s29 }
 0x284   : > { %p1556_p7 = pnand %p1555_p4, %p1688_p5 }
 0x285   : > { %p1561_p11 = por %p1560_p10, %p1559_p9 }
 0x286   : > { %p1557_p8 = pneg %p1556_p7 }
 0x287   : > { %p1563_p13 = por %p1562_p12, %p1561_p11 }
 0x289   : > { %p1564_p0 = pnand %p1563_p13, %p1557_p8 }
 0x28b   : > { %1567 = shalt.err (!%p1564_p0)
}
 0x28c   : > { %s1608_s21 = smov 128   ;;  %s1609_s23 = smov 8  }
 0x28d   : > { %1492 = dma.vmem_to_hbm [thread:$0]  (%p1688_p5), %s1815_s19, 256, %s1820_s29, %s1822_s13, %s1608_s21, %s1608_s21, %s1609_s23  }
 0x28e PF: > { %p1498_p1 = scmp.ge.s32.totalorder %s1602_s27, 2  ;;  %s1122_s28 = sand.u32 1, %s1590_s24  }
 0x28f   : > { %s1123_s22 = scalar_lea.sflag [#allocation3], %s1122_s28 }
 0x290   : > { %p1495_p2 = pnand %p1498_p1, %p1692_p6 }
 0x292   : > { %1585 = dma.done.wait (!%p1495_p2), %s1123_s22, 256  }
 0x293   : > { %1587 = vsyncadd (!%p1495_p2), %s1123_s22, 4294967040  ;;  %p17_p3 = scmp.ge.s32.totalorder %s1675_s30, 5   ;;  %s1873_s24 = smov %s1594_s25 }
 0x294   : > { %s1874_s25 = smov %s1598_s26  ;;  %s1875_s26 = smov %s1686_s10 }
 0x295   : > { %s1876_s27 = smov %s1675_s30  ;;  %19 = sbr.rel (!%p17_p3) target bundleno = 3 (0x3), region = 86 }
 0x29c   :  { %1128 = vsyncpa [#allocation3], 1 }
 0x29d   :  { %1130 = vsyncpa [#allocation3 + $0x1], 1 }

// kernel: tpu_custom_call.1
= control target key start
LH: loop header
LB: loop body
LE: loop exit
PB: predicated region body
PF: predicated region fallthrough
CT: control target
= control target key end

     0   :  { %12 = vsyncpa [#allocation3], 0  ;;  %s1863_s0 = inlined_call_operand.vmem [shape: s32[48,2], index: 0, kind: input, shape index: {}]   ;;  %s1864_s1 = inlined_call_operand.vmem [shape: f32[48,16], index: 1, kind: input, shape index: {}]   ;;  %s1865_s2 = inlined_call_operand.vmem [shape: f32[48,64], index: 2, kind: input, shape index: {}]   ;;  %s1866_s3 = inlined_call_operand.vmem [shape: f32[16,64], index: 3, kind: input, shape index: {}]   ;;  %s1867_s4 = inlined_call_operand.vmem [shape: f32[1,64], index: 4, kind: input, shape index: {}]   ;;  %s1868_s5 = inlined_call_operand.vmem [shape: f32[64,128], index: 5, kind: input, shape index: {}]   ;;  %s1869_s6 = inlined_call_operand.vmem [shape: f32[1,128], index: 6, kind: input, shape index: {}]   ;;  %s1870_s7 = inlined_call_operand.hbm [shape: f32[48,128], index: 7, kind: output, shape index: {}]  }
   0x1   :  { %14 = vsyncpa [#allocation3 + $0x1], 0  ;;  %s1650_s24 = smov 0   ;;  %s1652_s25 = smov 0  }
   0x2   :  { %s1654_s26 = smov 0   ;;  %s1656_s27 = smov 0  }
   0x3 LB: > { %s1671_s28 = sadd.s32 4294967295, %s1602_s27   ;;  %s1181_s29 = sadd.s32 4294967294, %s1602_s27   ;;  %s1602_s27 = sphi %s1656_s27, %s1876_s27   ;;  %s1598_s26 = sphi %s1654_s26, %s1875_s26   ;;  %s1594_s25 = sphi %s1652_s25, %s1874_s25   ;;  %s1590_s24 = sphi %s1650_s24, %s1873_s24  }
   0x4   : > { %s1675_s30 = sadd.s32 1, %s1602_s27   ;;  %s184_s8 = sadd.s32 1, %s1598_s26 }
   0x5   : > { %s181_s9 = ssub.s32 %s1602_s27, %s1675_s30  ;;  %p194_p0 = scmp.ne.s32.totalorder %s1598_s26, %s1594_s25 }
   0x6   : > { %p182_p1 = scmp.eq.s32.totalorder %s181_s9, 0  ;;  %p195_p2 = scmp.eq.s32.totalorder %s1671_s28, 2 }
   0x7   : > { %p200_p3 = scmp.ne.s32.totalorder %s1594_s25, %s1590_s24  ;;  %p201_p4 = scmp.eq.s32.totalorder %s1181_s29, 2 }
   0x8   : > { %s1686_s10 = scalar_select %p182_p1, %s1598_s26, %s184_s8  }
   0x9   : > { %p1688_p5 = por %p195_p2, %p194_p0  ;;  %p1692_p6 = por %p201_p4, %p200_p3 }
   0xa   : > { %p1184_p7 = scmp.ge.s32.totalorder %s1602_s27, 1  ;;  %p252_p8 = scmp.lt.s32.totalorder %s1602_s27, 4 }
   0xc   : > { %p253_p9 = pnand %p1184_p7, %p252_p8 }
   0xd   : > { %s1186_s13 = sshll.u32 (!%p253_p9), %s1671_s28, 1  ;;  %v328_v0 = vld [vmem:[%s1865_s2] sm:$0xff] (!%p253_p9)  ;;  %v329_v1 = vld [vmem:[%s1865_s2 + $0x8] sm:$0xff] (!%p253_p9)  ;;  %v1604_v2 = vmov (!%p253_p9), 0   ;;  %v330_v7 = vld [vmem:[%s1865_s2 + $0x10] sm:$0xff] (!%p253_p9)  ;;  %v1605_v25 = vmov (!%p253_p9), 1   ;;  %v304_v57 = vlaneseq (!%p253_p9) }
   0xe   : > { %256 = sbr.rel (%p253_p9) target bundleno = 654 (0x28e), region = 48  ;;  %1538 = vset.pattern.permute.xlu1 (!%p253_p9), %v1604_v2  ;;  %1536 = vset.pattern.permute.xlu0 (!%p253_p9), %v1604_v2  ;;  %p290_p10 = scmp.lt.s32.totalorder (!%p253_p9), %s1186_s13, 5  ;;  %v428_v3 = vand.u32 (!%p253_p9), 4294901760, %v328_v0  ;;  %v431_v4 = vand.u32 (!%p253_p9), 4294901760, %v329_v1  ;;  %v331_v8 = vld [vmem:[%s1865_s2 + $0x18] sm:$0xff] (!%p253_p9)  ;;  %v434_v10 = vand.u32 (!%p253_p9), 4294901760, %v330_v7 }
   0xf   : > { %v437_v11 = vand.u32 (!%p253_p9), 4294901760, %v331_v8  ;;  %v336_v12 = vld [vmem:[%s1866_s3] sm:$0xff] (!%p253_p9)  ;;  %v337_v13 = vld [vmem:[%s1866_s3 + $0x8] sm:$0xff] (!%p253_p9)  ;;  %vm338_vm0 = vcmask (!%p253_p9), 130048   ;;  %v305_v60 = vand.u32 (!%p253_p9), 127, %v304_v57  ;;  %vm420_vm4 = vcmask (!%p253_p9), 392192  }
  0x10   : > { %v1707_v5 = vsub.f32 (!%p253_p9), %v328_v0, %v428_v3  ;;  %v1709_v6 = vsub.f32 (!%p253_p9), %v329_v1, %v431_v4  ;;  %v1731_v16 = vpack.c.bf16 (!%p253_p9), %v431_v4, %v428_v3  ;;  %v1388_v17 = vpack.c.bf16 (!%p253_p9), %v337_v13, %v336_v12  ;;  %v332_v21 = vld [vmem:[%s1865_s2 + $0x20] sm:$0xff] (!%p253_p9)  ;;  %v333_v22 = vld [vmem:[%s1865_s2 + $0x28] sm:$0xff] (!%p253_p9)  ;;  %s286_s14 = sand.u32 (!%p253_p9), 1, %s1594_s25   ;;  %s1209_s20 = sshll.u32 (!%p253_p9), %s1671_s28, 8 }
  0x11   : > { %v1733_v18 = vsub.f32 (!%p253_p9), %v330_v7, %v434_v10  ;;  %v541_v19 = vsub.f32 (!%p253_p9), %v331_v8, %v437_v11  ;;  %v440_v23 = vand.u32 (!%p253_p9), 4294901760, %v332_v21  ;;  %v443_v24 = vand.u32 (!%p253_p9), 4294901760, %v333_v22  ;;  %v992_v12 = vld [vmem:[%s1868_s5] sm:$0xff] (!%p253_p9)  ;;  %v993_v13 = vld [vmem:[%s1868_s5 + $0x8] sm:$0xff] (!%p253_p9)  ;;  %s1185_s15 = sshll.u32 (!%p253_p9), %s286_s14, 4 }
  0x12   : > { %v1416_v9 = vpack.c.bf16 (!%p253_p9), %v1709_v6, %v1707_v5  ;;  %1389 = vmatprep.subr.bf16.mxu1 (!%p253_p9), %v1388_v17  ;;  %v1748_v28 = vpack.c.bf16 (!%p253_p9), %v437_v11, %v434_v10  ;;  %v521_v33 = vand.u32 (!%p253_p9), 4294901760, %v1707_v5  ;;  %v528_v34 = vand.u32 (!%p253_p9), 4294901760, %v1709_v6  ;;  %s288_s18 = scalar_lea.vmem (!%p253_p9), [#allocation2], %s1185_s15 }
  0x13   : > { %v1420_v20 = vpack.c.bf16 (!%p253_p9), %v541_v19, %v1733_v18  ;;  %1391 = vmatpush3.bf16.msra.mxu1 (!%p253_p9), %v1388_v17  ;;  %v548_v26 = vsub.f32 (!%p253_p9), %v332_v21, %v440_v23  ;;  %v555_v27 = vsub.f32 (!%p253_p9), %v333_v22, %v443_v24  ;;  %v1751_v32 = vpack.c.bf16 (!%p253_p9), %v443_v24, %v440_v23  ;;  %v998_v21 = vld [vmem:[%s1868_s5 + $0x30] sm:$0xff] (!%p253_p9)  ;;  %v999_v22 = vld [vmem:[%s1868_s5 + $0x38] sm:$0xff] (!%p253_p9)  ;;  %s1107_s19 = sshll.u32 (!%p253_p9), %s288_s18, 4  ;;  %s1815_s19 = int_to_ptr.vmem [resolvable:$true] %s1107_s19 }
  0x14   : > { %1417 = vmatprep.subr.bf16.mxu0 (!%p253_p9), %v1416_v9  ;;  %1393 = vmatprep.subr.bf16.mxu1 (!%p253_p9), %v1731_v16  ;;  %v522_v35 = vsub.f32 (!%p253_p9), %v1707_v5, %v521_v33  ;;  %v529_v36 = vsub.f32 (!%p253_p9), %v1709_v6, %v528_v34  ;;  %v535_v39 = vand.u32 (!%p253_p9), 4294901760, %v1733_v18  ;;  %v542_v40 = vand.u32 (!%p253_p9), 4294901760, %v541_v19  ;;  %s1540_s28 = scalar_lea.vmem (!%p253_p9), %s1815_s19, 256 }
  0x15   : > { %s1878_s13 = smov (!%p290_p10, %s1186_s13), 5  ;;  %1419 = vmatpush3.bf16.msra.mxu0 %v1416_v9  ;;  %v1424_v31 = vpack.c.bf16 %v555_v27, %v548_v26  ;;  %v549_v46 = vand.u32 4294901760, %v548_v26  ;;  %v556_v47 = vand.u32 4294901760, %v555_v27  ;;  %v1440_v51 = vpack.c.bf16 %v528_v34, %v521_v33  ;;  %p1541_p11 = scmp.ne.s32.totalorder %s1815_s19, %s1540_s28 }
  0x16   : > { %s1187_s22 = sshll.u32 %s1878_s13, 3  ;;  %1421 = vmatprep.subr.bf16.mxu0 %v1420_v20  ;;  %v523_v37 = vand.u32 4294901760, %v522_v35  ;;  %v530_v38 = vand.u32 4294901760, %v529_v36  ;;  %v536_v42 = vsub.f32 %v1733_v18, %v535_v39  ;;  %v543_v43 = vsub.f32 %v541_v19, %v542_v40  ;;  %v996_v18 = vld [vmem:[%s1868_s5 + $0x20] sm:$0xff]  ;;  %v997_v19 = vld [vmem:[%s1868_s5 + $0x28] sm:$0xff]  ;;  %s1822_s13 = scalar_lea.sflag [#allocation3], %s286_s14 }
  0x17   : > { %s293_s8 = scalar_lea.vmem %s1863_s0, %s1187_s22  ;;  %s299_s29 = scalar_lea.vmem %s1864_s1, %s1187_s22  ;;  %v550_v49 = vsub.f32 %v548_v26, %v549_v46  ;;  %v557_v50 = vsub.f32 %v555_v27, %v556_v47  ;;  %v1444_v55 = vpack.c.bf16 %v542_v40, %v535_v39  ;;  %v1448_v56 = vpack.c.bf16 %v556_v47, %v549_v46  ;;  %v1200_v27 = vld [vmem:[%s1867_s4] ss:$0 sm:$0xff] }
  0x18   : > { %v303_v14 = vld [vmem:[%s293_s8 + $0x8] sm:$0xff]  ;;  %v302_v15 = vld [vmem:[%s293_s8] sm:$0xff]  ;;  %v1404_v41 = vpack.c.bf16 %v530_v38, %v523_v37  ;;  %v537_v44 = vand.u32 4294901760, %v536_v42  ;;  %v544_v45 = vand.u32 4294901760, %v543_v43  ;;  %v1606_v63 = vmov 0.0   ;;  %p1542_p12 = pnand %p1541_p11, %p1688_p5  ;;  %s1607_s22 = smov [#allocation2]  }
  0x19   : > { %310 = vperm.xlu1 %1538, %v303_v14   ;;  %307 = vperm.xlu0 %1536, %v302_v15   ;;  %v334_v29 = vld [vmem:[%s299_s29] sm:$0xff]  ;;  %v335_v30 = vld [vmem:[%s299_s29 + $0x8] sm:$0xff]  ;;  %v551_v52 = vand.u32 4294901760, %v550_v49  ;;  %v558_v53 = vand.u32 4294901760, %v557_v50  ;;  %v1476_v23 = vpack.c.bf16 %v999_v22, %v998_v21  ;;  %vm1007_vm8 = vcmask 523264   ;;  %s1820_s29 = scalar_lea.hbm %s1870_s7, %s1209_s20  ;;  %s1544_s8 = sshll.u32 %s1607_s22, 4  ;;  %s1545_s8 = int_to_ptr.vmem [resolvable:$false] %s1544_s8 }
  0x1a   : > { %1423 = vmatpush3.bf16.msra.mxu0 %v1420_v20  ;;  %1276 = vmatprep.mubr.msk.f32.mxu1 %vm338_vm0, %v334_v29  ;;  %v1408_v48 = vpack.c.bf16 %v544_v45, %v537_v44  ;;  %v1472_v20 = vpack.c.bf16 %v997_v19, %v996_v18  ;;  %v1201_v35 = vld [vmem:[%s1869_s6] ss:$0 sm:$0xff]  ;;  %p1543_p13 = pneg %p1542_p12  ;;  %s1546_s9 = scalar_lea.vmem %s1545_s8, 512 }
  0x1b   : > { %1277 = vmatmul.mubr.msk.f32.vlgmr.msra.gmra.mrb[0].mxu1 %vm338_vm0, %v335_v30  ;;  %1425 = vmatprep.subr.bf16.mxu0 %v1424_v31  ;;  %v1412_v54 = vpack.c.bf16 %v558_v53, %v551_v52  ;;  %p1547_p0 = scmp.lt.s32.totalorder %s1815_s19, %s1545_s8  ;;  %p1548_p1 = scmp.lt.s32.totalorder %s1546_s9, %s1540_s28 }
  0x1c   : > { %1395 = vmatpush3.bf16.msra.mxu1 %v1731_v16 }
  0x1d   : > { %1539 = vset.pattern.permute.xlu1 %v1605_v25  ;;  %1537 = vset.pattern.permute.xlu0 %v1605_v25  ;;  %p1549_p2 = por %p1548_p1, %p1547_p0 }
  0x1e   : > { %318 = vperm.xlu1 %1539, %v303_v14   ;;  %315 = vperm.xlu0 %1537, %v302_v15   ;;  %v994_v14 = vld [vmem:[%s1868_s5 + $0x10] sm:$0xff]  ;;  %v1464_v15 = vpack.c.bf16 %v993_v13, %v992_v12 }
  0x1f   : > { %1397 = vmatprep.subr.bf16.mxu1 %v1748_v28  ;;  %1427 = vmatpush3.bf16.msra.mxu0 %v1424_v31  ;;  %p1550_p3 = pnand %p1549_p2, %p1543_p13 }
  0x20   : > { %1429 = vmatprep.subr.bf16.mxu0 %v1731_v16  ;;  %1399 = vmatpush3.bf16.msra.mxu1 %v1748_v28 }
  0x21   : > { %1401 = vmatprep.subr.bf16.mxu1 %v1751_v32 }
  0x24   : > { %1403 = vmatpush3.bf16.msra.mxu1 %v1751_v32 }
  0x25   : > { %1405 = vmatprep.subr.bf16.mxu1 %v1404_v41 }
  0x98   : > { %v308_v58 = vpop.permute.xlu0 %307  ;;  %v311_v59 = vpop.permute.xlu1 %310 }
  0x99   : > { %vm313_vm1 = vcmp.eq.s32.totalorder %v305_v60, %v311_v59  ;;  %vm312_vm5 = vcmp.eq.s32.totalorder %v305_v60, %v308_v58 }
  0x9d   : > { %v319_v61 = vpop.permute.xlu1 %318  ;;  %v316_v62 = vpop.permute.xlu0 %315 }
  0x9e   : > { %vm321_vm2 = vcmp.eq.s32.totalorder %v305_v60, %v319_v61  ;;  %vm320_vm3 = vcmp.eq.s32.totalorder %v305_v60, %v316_v62 }
  0x9f   : > { %vm323_vm6 = vmor %vm313_vm1, %vm321_vm2 }
  0xa0   : > { %v1191_v0 = vsel %vm323_vm6, 1.0, %v1606_v63  ;;  %vm322_vm7 = vmor %vm312_vm5, %vm320_vm3 }
  0xa1   : > { %v1190_v1 = vsel %vm322_vm7, 1.0, %v1606_v63  ;;  %v425_v2 = vsel %vm420_vm4, %v1191_v0, 0 }
  0xa2   : > { %v422_v3 = vsel %vm420_vm4, %v1190_v1, 0  ;;  %v509_v4 = vsub.f32 %v425_v2, %v425_v2 }
  0xa3   : > { %v499_v5 = vsub.f32 %v422_v3, %v422_v3 }
  0xa4   : > { %v510_v6 = vand.u32 4294901760, %v509_v4 }
  0xa5   : > { %1321 = vmatprep.mubr.f32.mxu0 %v499_v5  ;;  %v500_v7 = vand.u32 4294901760, %v499_v5 }
  0xa6   : > { %1322 = vmatmul.mubr.f32.vlgmr.msra.gmra.mrb[0].mxu0 %v509_v4  ;;  %v511_v8 = vsub.f32 %v509_v4, %v510_v6 }
  0xa7   : > { %1431 = vmatpush3.bf16.msra.mxu0 %v1731_v16  ;;  %1336 = vmatprep.mubr.f32.mxu0 %v500_v7  ;;  %v501_v9 = vsub.f32 %v499_v5, %v500_v7 }
  0xa8   : > { %1433 = vmatprep.subr.bf16.mxu0 %v1748_v28  ;;  %v512_v10 = vand.u32 4294901760, %v511_v8 }
  0xa9   : > { %v502_v11 = vand.u32 4294901760, %v501_v9 }
  0xab   : > { %1435 = vmatpush3.bf16.msra.mxu0 %v1748_v28  ;;  %1291 = vmatprep.mubr.f32.mxu1 %v502_v11 }
  0xac   : > { %1292 = vmatmul.mubr.f32.vlgmr.msra.gmra.mrb[0].mxu1 %v512_v10  ;;  %1437 = vmatprep.subr.bf16.mxu0 %v1751_v32 }
  0xad   : > { %1407 = vmatpush3.bf16.msra.mxu1 %v1404_v41  ;;  %1306 = vmatprep.mubr.msk.f32.mxu1 %vm420_vm4, %v1190_v1 }
  0xae   : > { %1409 = vmatprep.subr.bf16.mxu1 %v1408_v48 }
  0xaf   : > { %1439 = vmatpush3.bf16.msra.mxu0 %v1751_v32 }
  0xb0   : > { %1441 = vmatprep.subr.bf16.mxu0 %v1440_v51 }
  0xb1   : > { %1411 = vmatpush3.bf16.msra.mxu1 %v1408_v48 }
  0xb2   : > { %1337 = vmatmul.mubr.f32.vlgmr.msra.gmra.mrb[0].mxu0 %v510_v6  ;;  %1413 = vmatprep.subr.bf16.mxu1 %v1412_v54 }
  0xb3   : > { %1443 = vmatpush3.bf16.msra.mxu0 %v1440_v51  ;;  %1351 = vmatprep.mubr.msk.f32.mxu0 %vm420_vm4, %v1190_v1 }
  0xb4   : > { %1445 = vmatprep.subr.bf16.mxu0 %v1444_v55 }
  0xb5   : > { %1415 = vmatpush3.bf16.msra.mxu1 %v1412_v54 }
  0xb6   : > { %1465 = vmatprep.subr.bf16.mxu1 %v1464_v15 }
  0xb7   : > { %1447 = vmatpush3.bf16.msra.mxu0 %v1444_v55 }
  0xb8   : > { %1307 = vmatmul.mubr.msk.f32.vlgmr.msra.gmra.mrb[0].mxu1 %vm420_vm4, %v1191_v0  ;;  %1449 = vmatprep.subr.bf16.mxu0 %v1448_v56 }
  0xb9   : > { %1467 = vmatpush3.bf16.msra.mxu1 %v1464_v15 }
  0xbb   : > { %1451 = vmatpush3.bf16.msra.mxu0 %v1448_v56 }
  0xbc   : > { %1453 = vmatprep.subr.bf16.mxu0 %v1731_v16 }
  0xbe   : > { %1352 = vmatmul.mubr.msk.f32.vlgmr.msra.gmra.mrb[0].mxu0 %vm420_vm4, %v1191_v0 }
  0xbf   : > { %1455 = vmatpush3.bf16.msra.mxu0 %v1731_v16  ;;  %1366 = vmatprep.mubr.msk.f32.mxu0 %vm420_vm4, %v1190_v1  ;;  %v995_v16 = vld [vmem:[%s1868_s5 + $0x18] sm:$0xff] }
  0xc0   : > { %1457 = vmatprep.subr.bf16.mxu0 %v1748_v28  ;;  %v1468_v17 = vpack.c.bf16 %v995_v16, %v994_v14 }
  0xc2   : > { %1469 = vmatprep.subr.bf16.mxu1 %v1468_v17 }
  0xc3   : > { %1459 = vmatpush3.bf16.msra.mxu0 %v1748_v28  ;;  %1471 = vmatpush3.bf16.msra.mxu1 %v1468_v17 }
  0xc4   : > { %1461 = vmatprep.subr.bf16.mxu0 %v1751_v32  ;;  %1473 = vmatprep.subr.bf16.mxu1 %v1472_v20 }
  0xc7   : > { %1463 = vmatpush3.bf16.msra.mxu0 %v1751_v32  ;;  %1475 = vmatpush3.bf16.msra.mxu1 %v1472_v20 }
  0xc8   : > { %1477 = vmatprep.subr.bf16.mxu1 %v1476_v23 }
  0xca   : > { %1367 = vmatmul.mubr.msk.f32.vlgmr.msra.gmra.mrb[0].mxu0 %vm420_vm4, %v1191_v0 }
  0xcb   : > { %1479 = vmatpush3.bf16.msra.mxu1 %v1476_v23 }
 0x18b   : > { %v1308_v24 = vpop.f32.mrb[0].mxu1 }
 0x18c   : > { %v615_v25 = vpop.f32.mrb[1].mxu1 }
 0x19d   : > { %v1368_v26 = vpop.f32.mrb[0].mxu0 }
 0x19e   : > { %v1480_v28 = vadd.f32 %v1368_v26, %v1308_v24  ;;  %v971_v29 = vpop.f32.mrb[1].mxu0 }
 0x19f   : > { %v1481_v30 = vadd.f32 %v971_v29, %v615_v25 }
 0x1a0   : > { %v989_v31 = vadd.f32 %v1480_v28, %v1200_v27 }
 0x1a1   : > { %v988_v32 = vadd.f32 %v1481_v30, %v1200_v27 }
 0x1a2   : > { %v991_v34 = vmax.f32 %v989_v31, 0.0 }
 0x1a3   : > { %v990_v33 = vmax.f32 %v988_v32, 0.0 }
 0x1a5   : > { %1385 = vmatprep.mubr.msk.f32.mxu1 %vm1007_vm8, %v990_v33 }
 0x1a6   : > { %1386 = vmatmul.mubr.msk.f32.vlgmr.msra.gmra.mrb[2].mxu1 %vm1007_vm8, %v991_v34 }
 0x279   : > { %v1387_v36 = vpop.f32.mrb[2].mxu1 }
 0x27a   : > { %v1086_v37 = vadd.f32 %v1387_v36, %v1201_v35  ;;  %v1080_v38 = vpop.f32.mrb[3].mxu1 }
 0x27b   : > { %v1081_v39 = vadd.f32 %v1201_v35, %v1080_v38 }
 0x27c   : > { %v1090_v40 = vmax.f32 %v1086_v37, 0.0 }
 0x27d   : > { %v1089_v41 = vmax.f32 %v1081_v39, 0.0 }
 0x27e   : > { %1092 = vst [vmem:[%s288_s18 + $0x8] sm:$0xff] %v1090_v40 }
 0x27f   : > { %1091 = vst [vmem:[%s288_s18] sm:$0xff] %v1089_v41 }
 0x280   : > { %1553 = shalt.err (!%p1550_p3)
}
 0x281   : > { %s1554_s14 = scalar_lea.hbm %s1820_s29, 256  ;;  %s1558_s17 = scalar_lea.hbm %s1870_s7, 768 }
 0x282   : > { %p1555_p4 = scmp.ne.s32.totalorder %s1820_s29, %s1554_s14  ;;  %p1559_p9 = scmp.lt.u32.totalorder %s1820_s29, %s1870_s7 }
 0x283   : > { %p1560_p10 = scmp.lt.u32.totalorder %s1558_s17, %s1554_s14  ;;  %p1562_p12 = scmp.lt.u32.totalorder %s1554_s14, %s1820_s29 }
 0x284   : > { %p1556_p7 = pnand %p1555_p4, %p1688_p5 }
 0x285   : > { %p1561_p11 = por %p1560_p10, %p1559_p9 }
 0x286   : > { %p1557_p8 = pneg %p1556_p7 }
 0x287   : > { %p1563_p13 = por %p1562_p12, %p1561_p11 }
 0x289   : > { %p1564_p0 = pnand %p1563_p13, %p1557_p8 }
 0x28b   : > { %1567 = shalt.err (!%p1564_p0)
}
 0x28c   : > { %s1608_s21 = smov 128   ;;  %s1609_s23 = smov 8  }
 0x28d   : > { %1492 = dma.vmem_to_hbm [thread:$0]  (%p1688_p5), %s1815_s19, 256, %s1820_s29, %s1822_s13, %s1608_s21, %s1608_s21, %s1609_s23  }
 0x28e PF: > { %p1498_p1 = scmp.ge.s32.totalorder %s1602_s27, 2  ;;  %s1122_s28 = sand.u32 1, %s1590_s24  }
 0x28f   : > { %s1123_s22 = scalar_lea.sflag [#allocation3], %s1122_s28 }
 0x290   : > { %p1495_p2 = pnand %p1498_p1, %p1692_p6 }
 0x292   : > { %1585 = dma.done.wait (!%p1495_p2), %s1123_s22, 256  }
 0x293   : > { %1587 = vsyncadd (!%p1495_p2), %s1123_s22, 4294967040  ;;  %p17_p3 = scmp.ge.s32.totalorder %s1675_s30, 5   ;;  %s1873_s24 = smov %s1594_s25 }
 0x294   : > { %s1874_s25 = smov %s1598_s26  ;;  %s1875_s26 = smov %s1686_s10 }
 0x295   : > { %s1876_s27 = smov %s1675_s30  ;;  %19 = sbr.rel (!%p17_p3) target bundleno = 3 (0x3), region = 86 }
 0x29c   :  { %1128 = vsyncpa [#allocation3], 1 }
 0x29d   :  { %1130 = vsyncpa [#allocation3 + $0x1], 1 }

</bundles_post_ra>
